<compile_context>
chip_gen: v7x
topology: tpu7x:2x2x1
jax: 0.10.0
libtpu: 0.0.40
codegen_flags: <defaults>
</compile_context>

<pallas_src>
import functools

import numpy as np
import jax
import jax.numpy as jnp
from jax import lax
from jax.experimental import pallas as pl
from jax.experimental.pallas import tpu as pltpu


def _vmem_spec():
    return pl.BlockSpec(memory_space=pltpu.MemorySpace.VMEM)


# ---------------------------------------------------------------------------
# Single fused kernel
# ---------------------------------------------------------------------------
def _convnet_kernel(x_ref, wc_ref, bc_ref, w1_ref, b1_ref, w2_ref, b2_ref, o_ref,
                    *, mk, fp):
    # x_ref : (B, Cin*L)        flattened NCL input
    # wc_ref: (Cin*L, mk*fp)    conv-as-matmul weight (all branches/taps/padding folded in)
    # bc_ref: (1, fp)           per-feature conv bias (zeros in lane padding)
    # w1_ref: (fp, H)  b1_ref: (1, H)
    # w2_ref: (H, 1)   b2_ref: (1, 1)
    conv = jnp.dot(x_ref[...], wc_ref[...], preferred_element_type=jnp.float32)  # (B, mk*fp)

    # MaxPool1d(mk): max over the mk pool-offset lane chunks (each 128-aligned, width fp).
    pooled = conv[:, 0:fp]
    for p in range(1, mk):
        pooled = jnp.maximum(pooled, conv[:, p * fp:(p + 1) * fp])

    # Bias + ReLU hoisted after the pool max (bias constant over window; ReLU/max monotone).
    act = jnp.maximum(pooled + bc_ref[...], 0.0)                                   # (B, fp)

    h = jnp.dot(act, w1_ref[...], preferred_element_type=jnp.float32) + b1_ref[...]
    h = jnp.maximum(h, 0.0)                                                        # (B, H)
    out = jnp.dot(h, w2_ref[...], preferred_element_type=jnp.float32) + b2_ref[...]
    o_ref[...] = out.astype(o_ref.dtype)


# ---------------------------------------------------------------------------
# Offline (weight-only) fusion of the PyTorch-layout parameters
# ---------------------------------------------------------------------------
def _branch_geometry(L, ks, d, mk):
    pads = [int(d[i] * (ks[i] - 1) / 2) for i in range(len(ks))]          # PyTorch conv1d() pad
    lconv = [L + 2 * pads[i] - d[i] * (ks[i] - 1) for i in range(len(ks))]
    lpool = [lc // mk for lc in lconv]                                    # MaxPool1d floor mode
    return pads, lconv, lpool


def build_fused_params(params, *, n_start, L, ks, d, max_ks):
    n_br = len(ks)
    c_out = [params[f"conv{i}_w"].shape[0] for i in range(n_br)]
    pads, _, lpool = _branch_geometry(L, ks, d, max_ks)
    sizes = [c_out[i] * lpool[i] for i in range(n_br)]
    foff = np.concatenate([[0], np.cumsum(sizes)]).astype(np.int64)
    F = int(foff[-1])
    Fp = -(-F // 128) * 128                     # lane-align the feature width

    # ---- conv stage as one matmul: scatter conv weights into (Cin*L, max_ks*Fp) ----
    rows, cols, vals = [], [], []
    for i in range(n_br):
        w = params[f"conv{i}_w"]                # (Cout, Cin, ks), PyTorch layout
        Cout, Cin, K = w.shape
        widx = []
        for lp in range(lpool[i]):
            for p in range(max_ks):
                t = max_ks * lp + p             # conv output position kept by the pool
                for k in range(K):
                    lin = t - pads[i] + k * d[i]          # input position (zero-padded conv)
                    if 0 <= lin < L:
                        for ci in range(Cin):
                            for co in range(Cout):
                                rows.append(ci * L + lin)
                                cols.append(p * Fp + int(foff[i]) + lp * Cout + co)
                                widx.append((co * Cin + ci) * K + k)
        vals.append(w.reshape(-1)[jnp.asarray(widx, jnp.int32)])
    wconv = jnp.zeros((n_start * L, max_ks * Fp), jnp.float32)
    wconv = wconv.at[jnp.asarray(rows, jnp.int32), jnp.asarray(cols, jnp.int32)].add(
        jnp.concatenate(vals).astype(jnp.float32))

    # Per-feature conv bias in the kernel's (lp, channel) lane order.
    bconv = jnp.concatenate(
        [jnp.tile(params[f"conv{i}_b"].astype(jnp.float32), (lpool[i],)) for i in range(n_br)])
    bconv = jnp.pad(bconv, (0, Fp - F)).reshape(1, Fp)

    # fc1: permute its columns (PyTorch flatten order = branch, channel, position) so it
    # consumes the kernel's natural (branch, position, channel) lane order directly.
    perm = np.empty((F,), np.int64)
    for i in range(n_br):
        for lp in range(lpool[i]):
            for co in range(c_out[i]):
                perm[int(foff[i]) + lp * c_out[i] + co] = int(foff[i]) + co * lpool[i] + lp
    w1 = params["fc1_w"][:, perm].T.astype(jnp.float32)                   # (F, H)
    w1 = jnp.pad(w1, ((0, Fp - F), (0, 0)))                               # zero rows for lane pad
    b1 = params["fc1_b"].reshape(1, -1).astype(jnp.float32)
    w2 = params["fc2_w"].T.astype(jnp.float32)                            # (H, 1)
    b2 = params["fc2_b"].reshape(1, -1).astype(jnp.float32)

    return dict(wconv=wconv, bconv=bconv, w1=w1, b1=b1, w2=w2, b2=b2, mk=max_ks, fp=Fp)


# ---------------------------------------------------------------------------
# Forward: one pallas_call, everything resident in VMEM (total < 1 MiB here)
# ---------------------------------------------------------------------------
def convnet_forward(x, fused):
    B, Cin, L = x.shape
    xf = x.reshape(B, Cin * L).astype(jnp.float32)      # only activation-side glue
    return pl.pallas_call(
        functools.partial(_convnet_kernel, mk=fused["mk"], fp=fused["fp"]),
        out_shape=jax.ShapeDtypeStruct((B, fused["w2"].shape[1]), jnp.float32),
        in_specs=[_vmem_spec()] * 7,
        out_specs=_vmem_spec(),
    )(xf, fused["wconv"], fused["bconv"], fused["w1"], fused["b1"], fused["w2"], fused["b2"])


# ---------------------------------------------------------------------------
# Deterministic parameter init (PyTorch-style uniform(+-1/sqrt(fan_in)))
# ---------------------------------------------------------------------------
def init_params(key, n_start, c_out, ks, fc_in):
    params = {}
    keys = jax.random.split(key, 10)
    for i in range(3):
        fan_in = n_start * ks[i]
        bound = 1.0 / jnp.sqrt(fan_in)
        params[f"conv{i}_w"] = jax.random.uniform(
            keys[2 * i], (c_out[i], n_start, ks[i]), jnp.float32, -bound, bound)
        params[f"conv{i}_b"] = jax.random.uniform(
            keys[2 * i + 1], (c_out[i],), jnp.float32, -bound, bound)
    b1 = 1.0 / jnp.sqrt(fc_in)
    params["fc1_w"] = jax.random.uniform(keys[6], (100, fc_in), jnp.float32, -b1, b1)
    params["fc1_b"] = jax.random.uniform(keys[7], (100,), jnp.float32, -b1, b1)
    b2 = 1.0 / jnp.sqrt(100.0)
    params["fc2_w"] = jax.random.uniform(keys[8], (1, 100), jnp.float32, -b2, b2)
    params["fc2_b"] = jax.random.uniform(keys[9], (1,), jnp.float32, -b2, b2)
    return params


# ---------------------------------------------------------------------------
# Pure-JAX reference (for correctness check only)
# ---------------------------------------------------------------------------
def reference_forward(x, params, *, ks, d, max_ks):
    B = x.shape[0]
    feats = []
    for i in range(3):
        w, b = params[f"conv{i}_w"], params[f"conv{i}_b"]
        pad = int(d[i] * (ks[i] - 1) / 2)
        y = lax.conv_general_dilated(
            x, w, window_strides=(1,), padding=[(pad, pad)],
            rhs_dilation=(d[i],), dimension_numbers=("NCH", "OIH", "NCH"))
        y = jnp.maximum(y + b[None, :, None], 0.0)
        Co, L = y.shape[1], y.shape[2]
        Lp = L // max_ks
        y = y[:, :, :Lp * max_ks].reshape(B, Co, Lp, max_ks).max(axis=-1)
        feats.append(y.reshape(B, -1))
    f = jnp.concatenate(feats, axis=1)
    h = jnp.maximum(f @ params["fc1_w"].T + params["fc1_b"], 0.0)
    return h @ params["fc2_w"].T + params["fc2_b"]


if __name__ == "__main__":
    # ConvNet(n_start=4, c_out=[8,8,8], ks=[3,5,7], d=[1,2,1], max_ks=2); s_len=28 (as in size()).
    B, n_start, L = 2, 4, 28
    c_out = (8, 8, 8)
    ks = (3, 5, 7)
    d = (1, 2, 1)
    max_ks = 2
    _, _, lpool = _branch_geometry(L, ks, d, max_ks)
    fc_in = sum(c_out[i] * lpool[i] for i in range(3))     # 336, matches ConvNet.size()

    key = jax.random.PRNGKey(0)
    kx, kp = jax.random.split(key)
    x = jax.random.normal(kx, (B, n_start, L), jnp.float32)
    params = init_params(kp, n_start, c_out, ks, fc_in)

    fused = build_fused_params(params, n_start=n_start, L=L, ks=ks, d=d, max_ks=max_ks)
    out = jax.block_until_ready(convnet_forward(x, fused))

    ref = reference_forward(x, params, ks=ks, d=d, max_ks=max_ks)
    assert out.shape == (B, 1), out.shape
    assert jnp.allclose(out, ref, atol=1e-3, rtol=1e-3), (out, ref)

    print("KERNEL_OK")
</pallas_src>

<mosaic_0001>
module attributes {stable_mosaic.version = 11 : i64} {
  func.func @_convnet_kernel(%arg0: memref<2x112xf32, #tpu.memory_space<vmem>>, %arg1: memref<112x768xf32, #tpu.memory_space<vmem>>, %arg2: memref<1x384xf32, #tpu.memory_space<vmem>>, %arg3: memref<384x100xf32, #tpu.memory_space<vmem>>, %arg4: memref<1x100xf32, #tpu.memory_space<vmem>>, %arg5: memref<100x1xf32, #tpu.memory_space<vmem>>, %arg6: memref<1x1xf32, #tpu.memory_space<vmem>>, %arg7: memref<2x1xf32, #tpu.memory_space<vmem>>) attributes {dimension_semantics = [], scalar_prefetch = 0 : i64, scratch_operands = 0 : i64, tpu.core_type = #tpu.core_type<tc>} {
    %c0 = arith.constant 0 : index
    %c0_0 = arith.constant 0 : index
    %0 = vector.load %arg0[%c0, %c0_0] : memref<2x112xf32, #tpu.memory_space<vmem>>, vector<2x112xf32>
    %c0_1 = arith.constant 0 : index
    %c0_2 = arith.constant 0 : index
    %1 = vector.load %arg1[%c0_1, %c0_2] : memref<112x768xf32, #tpu.memory_space<vmem>>, vector<112x768xf32>
    %cst = arith.constant dense<0.000000e+00> : vector<2x768xf32>
    %2 = tpu.matmul %0, %1, %cst {dimension_numbers = #tpu.dot_dimension_numbers<[1], [0], [0], [1], [0, 0, 1, 1], [], []>} : vector<2x112xf32>, vector<112x768xf32>, vector<2x768xf32> -> vector<2x768xf32>
    %3 = vector.extract_strided_slice %2 {offsets = [0, 0], sizes = [2, 384], strides = [1, 1]} : vector<2x768xf32> to vector<2x384xf32>
    %4 = vector.extract_strided_slice %2 {offsets = [0, 384], sizes = [2, 384], strides = [1, 1]} : vector<2x768xf32> to vector<2x384xf32>
    %5 = arith.maximumf %3, %4 : vector<2x384xf32>
    %c0_3 = arith.constant 0 : index
    %c0_4 = arith.constant 0 : index
    %6 = vector.load %arg2[%c0_3, %c0_4] : memref<1x384xf32, #tpu.memory_space<vmem>>, vector<1x384xf32>
    %7 = vector.broadcast %6 : vector<1x384xf32> to vector<2x384xf32>
    %8 = arith.addf %5, %7 : vector<2x384xf32>
    %cst_5 = arith.constant 0.000000e+00 : f32
    %9 = vector.broadcast %cst_5 : f32 to vector<2x384xf32>
    %10 = arith.maximumf %8, %9 : vector<2x384xf32>
    %c0_6 = arith.constant 0 : index
    %c0_7 = arith.constant 0 : index
    %11 = vector.load %arg3[%c0_6, %c0_7] : memref<384x100xf32, #tpu.memory_space<vmem>>, vector<384x100xf32>
    %cst_8 = arith.constant dense<0.000000e+00> : vector<2x100xf32>
    %12 = tpu.matmul %10, %11, %cst_8 {dimension_numbers = #tpu.dot_dimension_numbers<[1], [0], [0], [1], [0, 0, 1, 1], [], []>} : vector<2x384xf32>, vector<384x100xf32>, vector<2x100xf32> -> vector<2x100xf32>
    %c0_9 = arith.constant 0 : index
    %c0_10 = arith.constant 0 : index
    %13 = vector.load %arg4[%c0_9, %c0_10] : memref<1x100xf32, #tpu.memory_space<vmem>>, vector<1x100xf32>
    %14 = vector.broadcast %13 : vector<1x100xf32> to vector<2x100xf32>
    %15 = arith.addf %12, %14 : vector<2x100xf32>
    %cst_11 = arith.constant 0.000000e+00 : f32
    %16 = vector.broadcast %cst_11 : f32 to vector<2x100xf32>
    %17 = arith.maximumf %15, %16 : vector<2x100xf32>
    %c0_12 = arith.constant 0 : index
    %c0_13 = arith.constant 0 : index
    %18 = vector.load %arg5[%c0_12, %c0_13] : memref<100x1xf32, #tpu.memory_space<vmem>>, vector<100x1xf32>
    %cst_14 = arith.constant dense<0.000000e+00> : vector<2x1xf32>
    %19 = tpu.matmul %17, %18, %cst_14 {dimension_numbers = #tpu.dot_dimension_numbers<[1], [0], [0], [1], [0, 0, 1, 1], [], []>} : vector<2x100xf32>, vector<100x1xf32>, vector<2x1xf32> -> vector<2x1xf32>
    %c0_15 = arith.constant 0 : index
    %c0_16 = arith.constant 0 : index
    %20 = vector.load %arg6[%c0_15, %c0_16] : memref<1x1xf32, #tpu.memory_space<vmem>>, vector<1x1xf32>
    %21 = vector.broadcast %20 : vector<1x1xf32> to vector<2x1xf32>
    %22 = arith.addf %19, %21 : vector<2x1xf32>
    %c0_17 = arith.constant 0 : index
    %c0_18 = arith.constant 0 : index
    %23 = vector.load %arg7[%c0_17, %c0_18] : memref<2x1xf32, #tpu.memory_space<vmem>>, vector<2x1xf32>
    tpu.vector_store %arg7[%c0_17, %c0_18], %22 {strides = array<i32>} : memref<2x1xf32, #tpu.memory_space<vmem>>, vector<2x1xf32>,
    return
  }
}

</mosaic_0001>

<bundles_post_ra>
// kernel: tpu_custom_call.1
= control target key start
LH: loop header
LB: loop body
LE: loop exit
PB: predicated region body
PF: predicated region fallthrough
CT: control target
= control target key end

     0   :  { %v954_v3 = vmov 0.0   ;;  %vm113_vm0 = vcmask 916480   ;;  %vm956_vm1 = vmmov 0   ;;  %vm576_vm2 = vcmask 1043456   ;;  %s1472_s1 = inlined_call_operand.vmem [shape: f32[112,768], index: 1, kind: input, shape index: {}]   ;;  %s1473_s0 = inlined_call_operand.vmem [shape: f32[2,112], index: 0, kind: input, shape index: {}]   ;;  %s1474_s3 = inlined_call_operand.vmem [shape: f32[384,100], index: 3, kind: input, shape index: {}]   ;;  %s1475_s2 = inlined_call_operand.vmem [shape: f32[1,384], index: 2, kind: input, shape index: {}]   ;;  %s1476_s5 = inlined_call_operand.vmem [shape: f32[100,1], index: 5, kind: input, shape index: {}]   ;;  %s1477_s6 = inlined_call_operand.<no memory space> [shape: f32[1,1], index: 6, kind: input, shape index: {}]   ;;  %s1478_s4 = inlined_call_operand.vmem [shape: f32[1,100], index: 4, kind: input, shape index: {}]   ;;  %s1479_s7 = inlined_call_operand.vmem [shape: f32[2,1], index: 7, kind: output, shape index: {}]  }
   0x1   :  { %v30_v0 = vld [vmem:[%s1472_s1 + $0x8] sm:$0xff]  ;;  %v36_v1 = vld [vmem:[%s1472_s1 + $0x38] sm:$0xff]  ;;  %181 = vmatprep.mubr.f32.mxu0 %v954_v3  ;;  %252 = vmatprep.mubr.f32.mxu1 %v954_v3  ;;  %v29_v6 = vld [vmem:[%s1472_s1] sm:$0xff]  ;;  %vm572_vm3 = vcmask 818176   ;;  %vm650_vm4 = vcmask 1024  }
   0x2   :  { %v32_v2 = vld [vmem:[%s1472_s1 + $0x18] sm:$0xff]  ;;  %v793_v4 = vpack.c.bf16 %v36_v1, %v30_v0  ;;  %v38_v5 = vld [vmem:[%s1472_s1 + $0x48] sm:$0xff]  ;;  %v35_v7 = vld [vmem:[%s1472_s1 + $0x30] sm:$0xff] }
   0x3   :  { %v821_v8 = vpack.c.bf16 %v38_v5, %v32_v2  ;;  %v795_v9 = vpack.c.bf16 %v35_v7, %v29_v6  ;;  %v31_v10 = vld [vmem:[%s1472_s1 + $0x10] sm:$0xff]  ;;  %v37_v11 = vld [vmem:[%s1472_s1 + $0x40] sm:$0xff]  ;;  %v42_v12 = vld [vmem:[%s1472_s1 + $0x68] sm:$0xff] }
   0x4   :  { %794 = vmatprep.subr.bf16.mxu0 %v793_v4  ;;  %v823_v13 = vpack.c.bf16 %v37_v11, %v31_v10  ;;  %v48_v14 = vld [vmem:[%s1472_s1 + $0x98] sm:$0xff]  ;;  %v50_v16 = vld [vmem:[%s1472_s1 + $0xa8] sm:$0xff]  ;;  %v41_v19 = vld [vmem:[%s1472_s1 + $0x60] sm:$0xff] }
   0x5   :  { %v44_v15 = vld [vmem:[%s1472_s1 + $0x78] sm:$0xff]  ;;  %822 = vmatprep.subr.bf16.mxu1 %v821_v8  ;;  %796 = vmatpush1.bf16.msra.mxu0 %v795_v9  ;;  %v797_v17 = vpack.c.bf16 %v48_v14, %v42_v12  ;;  %v47_v20 = vld [vmem:[%s1472_s1 + $0x90] sm:$0xff]  ;;  %v49_v23 = vld [vmem:[%s1472_s1 + $0xa0] sm:$0xff] }
   0x6   :  { %v825_v18 = vpack.c.bf16 %v50_v16, %v44_v15  ;;  %v43_v21 = vld [vmem:[%s1472_s1 + $0x70] sm:$0xff]  ;;  %824 = vmatpush1.bf16.msra.mxu1 %v823_v13  ;;  %v799_v22 = vpack.c.bf16 %v47_v20, %v41_v19  ;;  %v54_v24 = vld [vmem:[%s1472_s1 + $0xc8] sm:$0xff]  ;;  %v60_v25 = vld [vmem:[%s1472_s1 + $0xf8] sm:$0xff] }
   0x7   :  { %798 = vmatprep.subr.bf16.mxu0 %v797_v17  ;;  %v827_v26 = vpack.c.bf16 %v49_v23, %v43_v21  ;;  %v801_v27 = vpack.c.bf16 %v60_v25, %v54_v24  ;;  %v56_v28 = vld [vmem:[%s1472_s1 + $0xd8] sm:$0xff]  ;;  %v62_v29 = vld [vmem:[%s1472_s1 + $0x108] sm:$0xff]  ;;  %v53_v30 = vld [vmem:[%s1472_s1 + $0xc0] sm:$0xff] }
   0x8   :  { %826 = vmatprep.subr.bf16.mxu1 %v825_v18  ;;  %v829_v31 = vpack.c.bf16 %v62_v29, %v56_v28  ;;  %v59_v32 = vld [vmem:[%s1472_s1 + $0xf0] sm:$0xff]  ;;  %v61_v34 = vld [vmem:[%s1472_s1 + $0x100] sm:$0xff]  ;;  %v66_v36 = vld [vmem:[%s1472_s1 + $0x128] sm:$0xff] }
   0x9   :  { %v55_v33 = vld [vmem:[%s1472_s1 + $0xd0] sm:$0xff]  ;;  %800 = vmatpush1.bf16.msra.mxu0 %v799_v22  ;;  %v803_v35 = vpack.c.bf16 %v59_v32, %v53_v30  ;;  %v72_v37 = vld [vmem:[%s1472_s1 + $0x158] sm:$0xff]  ;;  %v74_v41 = vld [vmem:[%s1472_s1 + $0x168] sm:$0xff] }
   0xa   :  { %v68_v38 = vld [vmem:[%s1472_s1 + $0x138] sm:$0xff]  ;;  %828 = vmatpush1.bf16.msra.mxu1 %v827_v26  ;;  %802 = vmatprep.subr.bf16.mxu0 %v801_v27  ;;  %v831_v39 = vpack.c.bf16 %v61_v34, %v55_v33  ;;  %v805_v40 = vpack.c.bf16 %v72_v37, %v66_v36  ;;  %v65_v42 = vld [vmem:[%s1472_s1 + $0x120] sm:$0xff]  ;;  %v71_v43 = vld [vmem:[%s1472_s1 + $0x150] sm:$0xff] }
   0xb   :  { %830 = vmatprep.subr.bf16.mxu1 %v829_v31  ;;  %v833_v44 = vpack.c.bf16 %v74_v41, %v68_v38  ;;  %v67_v45 = vld [vmem:[%s1472_s1 + $0x130] sm:$0xff]  ;;  %v73_v46 = vld [vmem:[%s1472_s1 + $0x160] sm:$0xff]  ;;  %v78_v47 = vld [vmem:[%s1472_s1 + $0x188] sm:$0xff]  ;;  %v807_v51 = vpack.c.bf16 %v71_v43, %v65_v42 }
   0xc   :  { %v84_v48 = vld [vmem:[%s1472_s1 + $0x1b8] sm:$0xff]  ;;  %v86_v50 = vld [vmem:[%s1472_s1 + $0x1c8] sm:$0xff]  ;;  %v835_v52 = vpack.c.bf16 %v73_v46, %v67_v45  ;;  %v77_v54 = vld [vmem:[%s1472_s1 + $0x180] sm:$0xff] }
   0xd   :  { %v80_v49 = vld [vmem:[%s1472_s1 + $0x198] sm:$0xff]  ;;  %804 = vmatpush1.bf16.msra.mxu0 %v803_v35  ;;  %v809_v53 = vpack.c.bf16 %v84_v48, %v78_v47  ;;  %v83_v55 = vld [vmem:[%s1472_s1 + $0x1b0] sm:$0xff]  ;;  %v85_v58 = vld [vmem:[%s1472_s1 + $0x1c0] sm:$0xff] }
   0xe   :  { %832 = vmatpush1.bf16.msra.mxu1 %v831_v39  ;;  %806 = vmatprep.subr.bf16.mxu0 %v805_v40  ;;  %v79_v56 = vld [vmem:[%s1472_s1 + $0x190] sm:$0xff]  ;;  %v837_v57 = vpack.c.bf16 %v86_v50, %v80_v49  ;;  %v90_v59 = vld [vmem:[%s1472_s1 + $0x1e8] sm:$0xff]  ;;  %v96_v60 = vld [vmem:[%s1472_s1 + $0x218] sm:$0xff]  ;;  %v811_v63 = vpack.c.bf16 %v83_v55, %v77_v54 }
   0xf   :  { %834 = vmatprep.subr.bf16.mxu1 %v833_v44  ;;  %v92_v61 = vld [vmem:[%s1472_s1 + $0x1f8] sm:$0xff]  ;;  %v98_v62 = vld [vmem:[%s1472_s1 + $0x228] sm:$0xff]  ;;  %v839_v0 = vpack.c.bf16 %v85_v58, %v79_v56  ;;  %v813_v1 = vpack.c.bf16 %v96_v60, %v90_v59  ;;  %v89_v2 = vld [vmem:[%s1472_s1 + $0x1e0] sm:$0xff] }
  0x10   :  { %v95_v4 = vld [vmem:[%s1472_s1 + $0x210] sm:$0xff]  ;;  %v841_v6 = vpack.c.bf16 %v98_v62, %v92_v61  ;;  %v97_v7 = vld [vmem:[%s1472_s1 + $0x220] sm:$0xff]  ;;  %v102_v8 = vld [vmem:[%s1472_s1 + $0x248] sm:$0xff] }
  0x11   :  { %808 = vmatpush1.bf16.msra.mxu0 %v807_v51  ;;  %v91_v5 = vld [vmem:[%s1472_s1 + $0x1f0] sm:$0xff]  ;;  %v108_v9 = vld [vmem:[%s1472_s1 + $0x278] sm:$0xff]  ;;  %v110_v11 = vld [vmem:[%s1472_s1 + $0x288] sm:$0xff]  ;;  %v815_v12 = vpack.c.bf16 %v95_v4, %v89_v2 }
  0x12   :  { %836 = vmatpush1.bf16.msra.mxu1 %v835_v52  ;;  %810 = vmatprep.subr.bf16.mxu0 %v809_v53  ;;  %v104_v10 = vld [vmem:[%s1472_s1 + $0x258] sm:$0xff]  ;;  %v843_v13 = vpack.c.bf16 %v97_v7, %v91_v5  ;;  %v817_v14 = vpack.c.bf16 %v108_v9, %v102_v8  ;;  %v101_v15 = vld [vmem:[%s1472_s1 + $0x240] sm:$0xff]  ;;  %v107_v16 = vld [vmem:[%s1472_s1 + $0x270] sm:$0xff] }
  0x13   :  { %838 = vmatprep.subr.bf16.mxu1 %v837_v57  ;;  %v103_v17 = vld [vmem:[%s1472_s1 + $0x250] sm:$0xff]  ;;  %v845_v18 = vpack.c.bf16 %v110_v11, %v104_v10  ;;  %v109_v19 = vld [vmem:[%s1472_s1 + $0x280] sm:$0xff]  ;;  %v34_v20 = vld [vmem:[%s1472_s1 + $0x28] sm:$0xff]  ;;  %v819_v22 = vpack.c.bf16 %v107_v16, %v101_v15  ;;  %v955_v10 = vmov 0.0|0.0  }
  0x14   :  { %v40_v21 = vld [vmem:[%s1472_s1 + $0x58] sm:$0xff]  ;;  %v847_v23 = vpack.c.bf16 %v109_v19, %v103_v17  ;;  %v33_v25 = vld [vmem:[%s1472_s1 + $0x20] sm:$0xff]  ;;  %v39_v26 = vld [vmem:[%s1472_s1 + $0x50] sm:$0xff] }
  0x15   :  { %812 = vmatpush1.bf16.msra.mxu0 %v811_v63  ;;  %v849_v24 = vpack.c.bf16 %v40_v21, %v34_v20  ;;  %v46_v27 = vld [vmem:[%s1472_s1 + $0x88] sm:$0xff]  ;;  %v52_v28 = vld [vmem:[%s1472_s1 + $0xb8] sm:$0xff]  ;;  %v28_v29 = vld [vmem:[%s1473_s0] sm:$0x3]  ;;  %v851_v30 = vpack.c.bf16 %v39_v26, %v33_v25 }
  0x16   :  { %840 = vmatpush1.bf16.msra.mxu1 %v839_v0  ;;  %814 = vmatprep.subr.bf16.mxu0 %v813_v1  ;;  %v853_v31 = vpack.c.bf16 %v52_v28, %v46_v27  ;;  %v45_v32 = vld [vmem:[%s1472_s1 + $0x80] sm:$0xff]  ;;  %v51_v33 = vld [vmem:[%s1472_s1 + $0xb0] sm:$0xff]  ;;  %v58_v34 = vld [vmem:[%s1472_s1 + $0xe8] sm:$0xff] }
  0x17   :  { %842 = vmatprep.subr.bf16.mxu1 %v841_v6  ;;  %v64_v35 = vld [vmem:[%s1472_s1 + $0x118] sm:$0xff]  ;;  %v855_v36 = vpack.c.bf16 %v51_v33, %v45_v32  ;;  %v57_v38 = vld [vmem:[%s1472_s1 + $0xe0] sm:$0xff]  ;;  %v63_v39 = vld [vmem:[%s1472_s1 + $0x110] sm:$0xff] }
  0x18   :  { %v857_v37 = vpack.c.bf16 %v64_v35, %v58_v34  ;;  %v70_v40 = vld [vmem:[%s1472_s1 + $0x148] sm:$0xff]  ;;  %v76_v41 = vld [vmem:[%s1472_s1 + $0x178] sm:$0xff]  ;;  %v859_v42 = vpack.c.bf16 %v63_v39, %v57_v38  ;;  %v69_v44 = vld [vmem:[%s1472_s1 + $0x140] sm:$0xff] }
  0x19   :  { %816 = vmatpush1.bf16.msra.mxu0 %v815_v12  ;;  %v861_v43 = vpack.c.bf16 %v76_v41, %v70_v40  ;;  %v75_v45 = vld [vmem:[%s1472_s1 + $0x170] sm:$0xff]  ;;  %v82_v46 = vld [vmem:[%s1472_s1 + $0x1a8] sm:$0xff]  ;;  %v88_v47 = vld [vmem:[%s1472_s1 + $0x1d8] sm:$0xff] }
  0x1a   :  { %844 = vmatpush1.bf16.msra.mxu1 %v843_v13  ;;  %818 = vmatprep.subr.bf16.mxu0 %v817_v14  ;;  %v863_v48 = vpack.c.bf16 %v75_v45, %v69_v44  ;;  %v865_v49 = vpack.c.bf16 %v88_v47, %v82_v46  ;;  %v81_v50 = vld [vmem:[%s1472_s1 + $0x1a0] sm:$0xff]  ;;  %v87_v51 = vld [vmem:[%s1472_s1 + $0x1d0] sm:$0xff]  ;;  %v94_v52 = vld [vmem:[%s1472_s1 + $0x208] sm:$0xff] }
  0x1b   :  { %846 = vmatprep.subr.bf16.mxu1 %v845_v18  ;;  %v100_v53 = vld [vmem:[%s1472_s1 + $0x238] sm:$0xff]  ;;  %v867_v54 = vpack.c.bf16 %v87_v51, %v81_v50  ;;  %v93_v56 = vld [vmem:[%s1472_s1 + $0x200] sm:$0xff]  ;;  %v99_v57 = vld [vmem:[%s1472_s1 + $0x230] sm:$0xff] }
  0x1c   :  { %v869_v55 = vpack.c.bf16 %v100_v53, %v94_v52  ;;  %v106_v58 = vld [vmem:[%s1472_s1 + $0x268] sm:$0xff]  ;;  %v112_v59 = vld [vmem:[%s1472_s1 + $0x298] sm:$0xff]  ;;  %v871_v60 = vpack.c.bf16 %v99_v57, %v93_v56  ;;  %v105_v62 = vld [vmem:[%s1472_s1 + $0x260] sm:$0xff] }
  0x1d   :  { %820 = vmatpush1.bf16.msra.mxu0 %v819_v22  ;;  %v873_v61 = vpack.c.bf16 %v112_v59, %v106_v58  ;;  %v111_v63 = vld [vmem:[%s1472_s1 + $0x290] sm:$0xff]  ;;  %v372_v1 = vld [vmem:[%s1474_s3 + $0x80] sm:$0xff]  ;;  %v373_v2 = vld [vmem:[%s1474_s3 + $0x88] sm:$0xff] }
  0x1e   :  { %848 = vmatpush1.bf16.msra.mxu1 %v847_v23  ;;  %850 = vmatprep.subr.bf16.mxu0 %v849_v24  ;;  %v875_v0 = vpack.c.bf16 %v111_v63, %v105_v62  ;;  %v877_v4 = vpack.c.bf16 %v373_v2, %v372_v1  ;;  %v356_v5 = vld [vmem:[%s1474_s3] sm:$0xff]  ;;  %v357_v6 = vld [vmem:[%s1474_s3 + $0x8] sm:$0xff]  ;;  %v374_v12 = vld [vmem:[%s1474_s3 + $0x90] sm:$0xff] }
  0x1f   :  { %v388_v7 = vld [vmem:[%s1474_s3 + $0x100] sm:$0xff]  ;;  %v879_v8 = vpack.c.bf16 %v357_v6, %v356_v5  ;;  %v389_v9 = vld [vmem:[%s1474_s3 + $0x108] sm:$0xff]  ;;  %v375_v13 = vld [vmem:[%s1474_s3 + $0x98] sm:$0xff] }
  0x20   :  { %656 = vmatmul.mubr.msk.f32.vlgmr.msra.gmra.mrb[0].mxu0 %vm113_vm0, %v28_v29  ;;  %878 = vmatprep.subr.bf16.mxu1 %v877_v4  ;;  %v910_v11 = vpack.c.bf16 %v389_v9, %v388_v7  ;;  %v881_v14 = vpack.c.bf16 %v375_v13, %v374_v12  ;;  %v358_v15 = vld [vmem:[%s1474_s3 + $0x10] sm:$0xff]  ;;  %v359_v16 = vld [vmem:[%s1474_s3 + $0x18] sm:$0xff]  ;;  %v376_v20 = vld [vmem:[%s1474_s3 + $0xa0] sm:$0xff] }
  0x21   :  { %657 = vmatmul.mubr.msk.f32.vlgmr.msra.gmra.mrb[0].mxu1 %vm113_vm0, %v28_v29  ;;  %852 = vmatpush1.bf16.msra.mxu0 %v851_v30  ;;  %v390_v17 = vld [vmem:[%s1474_s3 + $0x110] sm:$0xff]  ;;  %v883_v18 = vpack.c.bf16 %v359_v16, %v358_v15  ;;  %v391_v19 = vld [vmem:[%s1474_s3 + $0x118] sm:$0xff]  ;;  %v377_v21 = vld [vmem:[%s1474_s3 + $0xa8] sm:$0xff] }
  0x22   :  { %854 = vmatprep.subr.bf16.mxu0 %v853_v31  ;;  %323 = vmatprep.mubr.f32.mxu0 %v954_v3  ;;  %v913_v22 = vpack.c.bf16 %v391_v19, %v390_v17  ;;  %v885_v23 = vpack.c.bf16 %v377_v21, %v376_v20  ;;  %v360_v24 = vld [vmem:[%s1474_s3 + $0x20] sm:$0xff]  ;;  %v361_v25 = vld [vmem:[%s1474_s3 + $0x28] sm:$0xff]  ;;  %v379_v30 = vld [vmem:[%s1474_s3 + $0xb8] sm:$0xff] }
  0x23   :  { %880 = vmatpush3.bf16.msra.mxu1 %v879_v8  ;;  %v392_v26 = vld [vmem:[%s1474_s3 + $0x120] sm:$0xff]  ;;  %v887_v27 = vpack.c.bf16 %v361_v25, %v360_v24  ;;  %v393_v28 = vld [vmem:[%s1474_s3 + $0x128] sm:$0xff]  ;;  %v362_v33 = vld [vmem:[%s1474_s3 + $0x30] sm:$0xff] }
  0x24   :  { %882 = vmatprep.subr.bf16.mxu1 %v881_v14  ;;  %v916_v31 = vpack.c.bf16 %v393_v28, %v392_v26  ;;  %v363_v34 = vld [vmem:[%s1474_s3 + $0x38] sm:$0xff]  ;;  %v394_v35 = vld [vmem:[%s1474_s3 + $0x130] sm:$0xff]  ;;  %v381_v38 = vld [vmem:[%s1474_s3 + $0xc8] sm:$0xff] }
  0x25   :  { %856 = vmatpush1.bf16.msra.mxu0 %v855_v36  ;;  %v395_v36 = vld [vmem:[%s1474_s3 + $0x138] sm:$0xff]  ;;  %v891_v39 = vpack.c.bf16 %v363_v34, %v362_v33  ;;  %v396_v44 = vld [vmem:[%s1474_s3 + $0x140] sm:$0xff]  ;;  %v397_v45 = vld [vmem:[%s1474_s3 + $0x148] sm:$0xff] }
  0x26   :  { %858 = vmatprep.subr.bf16.mxu0 %v857_v37  ;;  %v380_v37 = vld [vmem:[%s1474_s3 + $0xc0] sm:$0xff]  ;;  %v919_v40 = vpack.c.bf16 %v395_v36, %v394_v35  ;;  %v382_v46 = vld [vmem:[%s1474_s3 + $0xd0] sm:$0xff]  ;;  %v383_v47 = vld [vmem:[%s1474_s3 + $0xd8] sm:$0xff] }
  0x27   :  { %884 = vmatpush3.bf16.msra.mxu1 %v883_v18  ;;  %v893_v41 = vpack.c.bf16 %v381_v38, %v380_v37  ;;  %v897_v50 = vpack.c.bf16 %v383_v47, %v382_v46  ;;  %v366_v51 = vld [vmem:[%s1474_s3 + $0x50] sm:$0xff]  ;;  %v367_v52 = vld [vmem:[%s1474_s3 + $0x58] sm:$0xff]  ;;  %v384_v57 = vld [vmem:[%s1474_s3 + $0xe0] sm:$0xff]  ;;  %v335_v18 = vlaneseq }
  0x28   :  { %886 = vmatprep.subr.bf16.mxu1 %v885_v23  ;;  %v398_v53 = vld [vmem:[%s1474_s3 + $0x150] sm:$0xff]  ;;  %v385_v58 = vld [vmem:[%s1474_s3 + $0xe8] sm:$0xff]  ;;  %v400_v62 = vld [vmem:[%s1474_s3 + $0x160] sm:$0xff] }
  0x29   :  { %860 = vmatpush1.bf16.msra.mxu0 %v859_v42  ;;  %v364_v42 = vld [vmem:[%s1474_s3 + $0x40] sm:$0xff]  ;;  %v901_v59 = vpack.c.bf16 %v385_v58, %v384_v57  ;;  %v386_v2 = vld [vmem:[%s1474_s3 + $0xf0] sm:$0xff]  ;;  %v387_v4 = vld [vmem:[%s1474_s3 + $0xf8] sm:$0xff]  ;;  %v336_v19 = vshrl.u32 %v335_v18, 7 }
  0x2a   :  { %862 = vmatprep.subr.bf16.mxu0 %v861_v43  ;;  %v365_v43 = vld [vmem:[%s1474_s3 + $0x48] sm:$0xff]  ;;  %v905_v5 = vpack.c.bf16 %v387_v4, %v386_v2  ;;  %v370_v6 = vld [vmem:[%s1474_s3 + $0x70] sm:$0xff]  ;;  %v371_v7 = vld [vmem:[%s1474_s3 + $0x78] sm:$0xff] }
  0x2b   :  { %888 = vmatpush3.bf16.msra.mxu1 %v887_v27  ;;  %v402_v8 = vld [vmem:[%s1474_s3 + $0x170] sm:$0xff]  ;;  %v907_v9 = vpack.c.bf16 %v371_v7, %v370_v6  ;;  %v337_v20 = vsub.s32 0, %v336_v19  ;;  %v333_v21 = vld [vmem:[%s1475_s2] sm:$0x7]  ;;  %v345_v23 = vsub.s32 2, %v336_v19  ;;  %v553_v33 = vld [vmem:[%s1476_s5 + $0x8] sm:$0xff] }
  0x2c   :  { %v558_v46 = vld [vmem:[%s1476_s5 + $0x30] sm:$0xff]  ;;  %v559_v47 = vld [vmem:[%s1476_s5 + $0x38] sm:$0xff]  ;;  %v659_v58 = vld [vmem:[%s1478_s4] ss:$0 sm:$0xff] }
  0x2d   :  { %864 = vmatpush1.bf16.msra.mxu0 %v863_v48  ;;  %v895_v48 = vpack.c.bf16 %v365_v43, %v364_v42  ;;  %v338_v24 = vrot.slane %v333_v21, %v337_v20  ;;  %v346_v27 = vrot.slane %v333_v21, %v345_v23  ;;  %v556_v43 = vld [vmem:[%s1476_s5 + $0x20] sm:$0xff] }
  0x2e   :  { %866 = vmatprep.subr.bf16.mxu0 %v865_v49  ;;  %v922_v49 = vpack.c.bf16 %v397_v45, %v396_v44  ;;  %v557_v44 = vld [vmem:[%s1476_s5 + $0x28] sm:$0xff] }
  0x2f   :  { %v940_v45 = vpack.c.bf16 %v557_v44, %v556_v43 }
  0x31   :  { %868 = vmatpush1.bf16.msra.mxu0 %v867_v54  ;;  %v399_v54 = vld [vmem:[%s1474_s3 + $0x158] sm:$0xff] }
  0x32   :  { %870 = vmatprep.subr.bf16.mxu0 %v869_v55  ;;  %v899_v55 = vpack.c.bf16 %v367_v52, %v366_v51  ;;  %v925_v56 = vpack.c.bf16 %v399_v54, %v398_v53  ;;  %v562_v52 = vld [vmem:[%s1476_s5 + $0x50] sm:$0xff]  ;;  %v563_v53 = vld [vmem:[%s1476_s5 + $0x58] sm:$0xff] }
  0x33   :  { %v949_v54 = vpack.c.bf16 %v563_v53, %v562_v52 }
  0x35   :  { %872 = vmatpush1.bf16.msra.mxu0 %v871_v60  ;;  %v368_v60 = vld [vmem:[%s1474_s3 + $0x60] sm:$0xff] }
  0x36   :  { %874 = vmatprep.subr.bf16.mxu0 %v873_v61  ;;  %v369_v61 = vld [vmem:[%s1474_s3 + $0x68] sm:$0xff] }
  0x37   :  { %v903_v63 = vpack.c.bf16 %v369_v61, %v368_v60 }
  0x39   :  { %876 = vmatpush1.bf16.msra.mxu0 %v875_v0  ;;  %v401_v0 = vld [vmem:[%s1474_s3 + $0x168] sm:$0xff] }
  0x3a   :  { %909 = vmatprep.subr.bf16.mxu0 %v955_v10  ;;  %v928_v1 = vpack.c.bf16 %v401_v0, %v400_v62 }
  0x3c   :  { %658 = vmatmul.mubr.msk.f32.vlgmr.msra.gmra.mrb[2].mxu0 %vm113_vm0, %v28_v29  ;;  %v378_v29 = vld [vmem:[%s1474_s3 + $0xb0] sm:$0xff] }
  0x3d   :  { %911 = vmatpush3.bf16.msra.mxu0 %v910_v11  ;;  %v889_v32 = vpack.c.bf16 %v379_v30, %v378_v29  ;;  %v403_v11 = vld [vmem:[%s1474_s3 + $0x178] sm:$0xff]  ;;  %761 = vmatprep.mubr.msk.f32.mxu0 %vm956_vm1, %v954_v3 }
  0x3e   :  { %912 = vmatprep.subr.bf16.mxu0 %v955_v10  ;;  %v931_v12 = vpack.c.bf16 %v403_v11, %v402_v8 }
  0x3f   :  { %890 = vmatprep.subr.bf16.mxu1 %v889_v32  ;;  %v552_v32 = vld [vmem:[%s1476_s5] sm:$0xff] }
  0x40   :  { %892 = vmatpush3.bf16.msra.mxu1 %v891_v39  ;;  %v934_v37 = vpack.c.bf16 %v553_v33, %v552_v32 }
  0x41   :  { %914 = vmatpush3.bf16.msra.mxu0 %v913_v22  ;;  %894 = vmatprep.subr.bf16.mxu1 %v893_v41  ;;  %v341_v22 = vsub.s32 1, %v336_v19  ;;  %v555_v41 = vld [vmem:[%s1476_s5 + $0x18] sm:$0xff] }
  0x42   :  { %915 = vmatprep.subr.bf16.mxu0 %v955_v10 }
  0x43   :  { %v342_v25 = vrot.slane %v333_v21, %v341_v22 }
  0x44   :  { %896 = vmatpush3.bf16.msra.mxu1 %v895_v48  ;;  %v943_v48 = vpack.c.bf16 %v559_v47, %v558_v46 }
  0x45   :  { %917 = vmatpush3.bf16.msra.mxu0 %v916_v31  ;;  %898 = vmatprep.subr.bf16.mxu1 %v897_v50  ;;  %v561_v50 = vld [vmem:[%s1476_s5 + $0x48] sm:$0xff] }
  0x46   :  { %918 = vmatprep.subr.bf16.mxu0 %v955_v10 }
  0x48   :  { %900 = vmatpush3.bf16.msra.mxu1 %v899_v55  ;;  %v564_v55 = vld [vmem:[%s1476_s5 + $0x60] sm:$0xf] }
  0x49   :  { %920 = vmatpush3.bf16.msra.mxu0 %v919_v40  ;;  %902 = vmatprep.subr.bf16.mxu1 %v901_v59  ;;  %v554_v40 = vld [vmem:[%s1476_s5 + $0x10] sm:$0xff] }
  0x4a   :  { %921 = vmatprep.subr.bf16.mxu0 %v955_v10  ;;  %v937_v42 = vpack.c.bf16 %v555_v41, %v554_v40 }
  0x4c   :  { %904 = vmatpush3.bf16.msra.mxu1 %v903_v63 }
  0x4d   :  { %923 = vmatpush3.bf16.msra.mxu0 %v922_v49  ;;  %906 = vmatprep.subr.bf16.mxu1 %v905_v5  ;;  %v560_v49 = vld [vmem:[%s1476_s5 + $0x40] sm:$0xff] }
  0x4e   :  { %924 = vmatprep.subr.bf16.mxu0 %v955_v10  ;;  %v946_v51 = vpack.c.bf16 %v561_v50, %v560_v49 }
  0x50   :  { %908 = vmatpush3.bf16.msra.mxu1 %v907_v9 }
  0x51   :  { %926 = vmatpush3.bf16.msra.mxu0 %v925_v56  ;;  %933 = vmatprep.subr.bf16.mxu1 %v955_v10 }
  0x52   :  { %927 = vmatprep.subr.bf16.mxu0 %v955_v10 }
  0x55   :  { %929 = vmatpush3.bf16.msra.mxu0 %v928_v1 }
  0x56   :  { %930 = vmatprep.subr.bf16.mxu0 %v955_v10 }
  0x59   :  { %932 = vmatpush3.bf16.msra.mxu0 %v931_v12 }
  0xf3   :  { %v183_v13 = vpop.f32.mrb[0].mxu0 }
  0xf4   :  { %v254_v14 = vpop.f32.mrb[0].mxu1  ;;  %v185_v15 = vpop.f32.mrb[1].mxu0 }
  0xf5   :  { %v256_v16 = vpop.f32.mrb[1].mxu1 }
  0xf6   :  { %v330_v17 = vmax.f32 %v183_v13, %v256_v16 }
  0xf8   :  { %v350_v30 = vadd.f32 %v338_v24, %v330_v17 }
  0xfa   :  { %v353_v38 = vmax.f32 %v350_v30, 0.0 }
 0x10f   :  { %v325_v26 = vpop.f32.mrb[2].mxu0 }
 0x110   :  { %v331_v28 = vmax.f32 %v185_v15, %v325_v26  ;;  %v327_v29 = vpop.f32.mrb[3].mxu0 }
 0x111   :  { %v332_v31 = vmax.f32 %v254_v14, %v327_v29 }
 0x112   :  { %v351_v34 = vadd.f32 %v342_v25, %v331_v28 }
 0x113   :  { %v352_v35 = vadd.f32 %v346_v27, %v332_v31 }
 0x114   :  { %v354_v36 = vmax.f32 %v351_v34, 0.0 }
 0x115   :  { %v355_v39 = vmax.f32 %v352_v35, 0.0 }
 0x116   :  { %475 = vmatprep.mubr.f32.mxu1 %v354_v36 }
 0x117   :  { %476 = vmatmul.mubr.f32.vlgmr.msra.gmra.mrb[2].mxu1 %v353_v38  ;;  %762 = vmatmul.mubr.f32.vlgmr.msra.gmra.mrb[4].mxu0 %v355_v39 }
 0x118   :  { %935 = vmatpush3.bf16.msra.mxu1 %v934_v37  ;;  %790 = vmatprep.mubr.msk.f32.mxu1 %vm956_vm1, %v954_v3 }
 0x119   :  { %936 = vmatprep.subr.bf16.mxu1 %v955_v10 }
 0x11c   :  { %938 = vmatpush3.bf16.msra.mxu1 %v937_v42 }
 0x11d   :  { %939 = vmatprep.subr.bf16.mxu1 %v955_v10 }
 0x120   :  { %941 = vmatpush3.bf16.msra.mxu1 %v940_v45 }
 0x121   :  { %942 = vmatprep.subr.bf16.mxu1 %v955_v10 }
 0x124   :  { %944 = vmatpush3.bf16.msra.mxu1 %v943_v48 }
 0x125   :  { %945 = vmatprep.subr.bf16.mxu1 %v955_v10 }
 0x128   :  { %947 = vmatpush3.bf16.msra.mxu1 %v946_v51 }
 0x129   :  { %948 = vmatprep.subr.bf16.mxu1 %v955_v10  ;;  %v12_v10 = vstv %s1477_s6 }
 0x12a   :  { %13 = vst [vmem:[#allocation2] sm:$0x1] %v12_v10 }
 0x12c   :  { %950 = vmatpush3.bf16.msra.mxu1 %v949_v54 }
 0x12d   :  { %788 = vmatprep.subr.mxu1 %v954_v3 }
 0x130   :  { %789 = vmatpush3.msk.msra.mxu1 %vm576_vm2, %v564_v55 }
 0x131   :  { %v660_v0 = vld [vmem:[#allocation2] ss:$0 sm:$0xff] }
 0x1ea   :  { %v695_v56 = vpop.f32.mrb[2].mxu1  ;;  %v547_v57 = vpop.f32.mrb[4].mxu0 }
 0x1eb   :  { %v696_v59 = vpop.f32.mrb[3].mxu1  ;;  %v763_v60 = vpop.f32.mrb[5].mxu0 }
 0x1ec   :  { %v697_v3 = vadd.f32 %v696_v59, %v695_v56 }
 0x1ee   :  { %v478_v61 = vadd.f32 %v697_v3, %v659_v58 }
 0x1f0   :  { %v548_v62 = vadd.f32 %v547_v57, %v478_v61 }
 0x1f2   :  { %v551_v63 = vmax.f32 %v548_v62, 0.0 }
 0x1f4   :  { %791 = vmatmul.mubr.msk.f32.vlgmr.msra.gmra.mrb[4].mxu1 %vm572_vm3, %v551_v63 }
 0x2c7   :  { %v646_v1 = vpop.f32.mrb[4].mxu1 }
 0x2c8   :  { %v647_v2 = vadd.f32 %v660_v0, %v646_v1  ;;  %v792_v4 = vpop.f32.mrb[5].mxu1 }
 0x2ca   :  { %651 = vst.msk [vmem:[%s1479_s7] sm:$0x3] %vm650_vm4, %v647_v2 }

</bundles_post_ra>
